<compile_context>
chip_gen: v6e
topology: v6e:2x2x1
jax: 0.10.0
libtpu: 0.0.40
codegen_flags: <defaults>
</compile_context>

<pallas_src>
import functools

import jax
import jax.numpy as jnp
from jax.experimental import pallas as pl
from jax.experimental.pallas import tpu as pltpu


# --------------------------------------------------------------------------- #
# Kernel
# --------------------------------------------------------------------------- #
def _sh_self_attn_kernel(x_ref, w_ref, z_ref, attn_ref, q_scr, k_scr, v_scr, *,
                         tq, s_len, flatten_attn, flatten_z, use_bf16):
    # x_ref:    (bb, s_pad, d)   batch block of inputs (resident across query tiles)
    # w_ref:    (d, 3d)          fused [Wq.T * d^-0.5 | Wk.T | Wv.T] (resident)
    # z_ref:    (bb, tq, d)  or (bb, tq*d)      output block
    # attn_ref: (bb, tq, s_pad) or (bb, tq*s_pad)
    # q/k/v_scr:(bb, s_pad, d)   full-sequence projections for this batch block
    bb, s_pad, d = x_ref.shape
    qt = pl.program_id(1)

    # ---- projections: once per batch block (query-tile 0) ------------------ #
    @pl.when(qt == 0)
    def _project():
        x2 = x_ref[...].reshape(bb * s_pad, d)       # free: s_pad % 8 == 0
        w = w_ref[...]
        if d % 128 == 0:
            # One dense MXU matmul, lane-aligned q/k/v splits.
            qkv = jnp.dot(x2, w, preferred_element_type=jnp.float32)
            q_all = qkv[:, :d]
            k_all = qkv[:, d:2 * d]
            v_all = qkv[:, 2 * d:]
        else:
            # Small D: slicing the (tiny) weight is cheaper than relaying out
            # the (bb*s_pad, 3d) qkv slab at non-lane-aligned offsets.
            q_all = jnp.dot(x2, w[:, :d], preferred_element_type=jnp.float32)
            k_all = jnp.dot(x2, w[:, d:2 * d], preferred_element_type=jnp.float32)
            v_all = jnp.dot(x2, w[:, 2 * d:], preferred_element_type=jnp.float32)
        q_scr[...] = q_all.reshape(bb, s_pad, d)
        k_scr[...] = k_all.reshape(bb, s_pad, d)
        v_scr[...] = v_all.reshape(bb, s_pad, d)

    # ---- attention for this query tile ------------------------------------ #
    row0 = pl.multiple_of(qt * tq, 8)                # tq is a multiple of 8
    q = q_scr[:, pl.ds(row0, tq), :]                 # (bb, tq, d), scale folded in
    k = k_scr[...]
    v = v_scr[...]
    if use_bf16:
        q = q.astype(jnp.bfloat16)
        k = k.astype(jnp.bfloat16)

    scores = jnp.einsum("bqd,bkd->bqk", q, k,
                        preferred_element_type=jnp.float32)   # (bb, tq, s_pad)

    if s_len < s_pad:
        # Mask out padded key columns so they don't leak into the softmax.
        key_ids = jax.lax.broadcasted_iota(jnp.int32, scores.shape, 2)
        scores = jnp.where(key_ids < s_len, scores, jnp.float32(-1e30))

    m = jnp.max(scores, axis=-1, keepdims=True)
    e = jnp.exp(scores - m)
    # Exact reciprocal keeps sum(attn, -1) == 1 within 1e-5 (approx=True would not).
    w_attn = e * pl.reciprocal(jnp.sum(e, axis=-1, keepdims=True))

    pv = w_attn.astype(jnp.bfloat16) if use_bf16 else w_attn
    vv = v.astype(jnp.bfloat16) if use_bf16 else v
    z = jnp.einsum("bqk,bkd->bqd", pv, vv, preferred_element_type=jnp.float32)

    # Lane-dense stores when the natural last dim would be a masked partial store.
    attn_ref[...] = w_attn.reshape(bb, tq * s_pad) if flatten_attn else w_attn
    z_ref[...] = z.reshape(bb, tq * d) if flatten_z else z


# --------------------------------------------------------------------------- #
# Planning helpers
# --------------------------------------------------------------------------- #
def _tpu_info(default_vmem=64 * 1024 * 1024):
    """(vmem_capacity_bytes, tensorcores_per_chip) with conservative fallbacks."""
    vmem = default_vmem
    cores = 1
    try:
        info = pltpu.get_tpu_info()
        vmem = int(getattr(info, "vmem_capacity_bytes", default_vmem))
        for attr in ("num_cores", "core_count", "num_tensorcores",
                     "tensorcore_count", "cores_per_chip", "num_cores_per_chip"):
            val = getattr(info, attr, None)
            if isinstance(val, int) and val > 0:
                cores = val
                break
    except Exception:
        pass
    return vmem, cores


def _plan_blocks(batch, s_pad, d, vmem_bytes, n_cores):
    """Pick (batch block bb, query tile tq) for a ~0.65*VMEM budget."""
    budget = max(8 << 20, int(vmem_bytes * 0.65))

    def footprint(bb, tq):
        # x (2-buf) + q/k/v scratch + projection temporaries  -> ~9 * S*D
        # z/attn outputs (2-buf) + q tile + scores/e/w temps   -> tq*(3D + 5S)
        # fused weight (<= 2 bufs)                             -> 6 * D^2
        words = (9 * bb * s_pad * d
                 + bb * tq * (3 * d + 5 * s_pad)
                 + 6 * d * d)
        return 4 * words

    divisors_b = [x for x in range(1, batch + 1) if batch % x == 0]

    # Prefer no query tiling with the biggest batch block that fits.
    bb = None
    for cand in sorted(divisors_b, reverse=True):
        if footprint(cand, s_pad) <= budget:
            bb = cand
            break
    if bb is not None:
        tq = s_pad
    else:
        # Whole-sequence scores don't fit even at bb=1: tile the query axis
        # (bounds VMEM independent of S -- the v7x 64 MiB case).
        bb = 1
        tq_cands = [t for t in range(8, s_pad + 1, 8) if s_pad % t == 0]
        tq = tq_cands[0] if tq_cands else s_pad
        for cand in sorted(tq_cands, reverse=True):
            if footprint(1, cand) <= budget:
                tq = cand
                break

    # Multi-TensorCore chips (v7x): keep >= n_cores parallel batch steps when
    # possible. Single-TC chips (v5e/v6e) keep the biggest block -- splitting
    # there is pure per-step overhead.
    if n_cores >= 2 and batch >= n_cores and (batch // bb) < n_cores:
        target = max(1, batch // n_cores)
        bb = max(x for x in divisors_b if x <= target)

    return bb, tq


# --------------------------------------------------------------------------- #
# Wrapper
# --------------------------------------------------------------------------- #
def sh_self_attention(x, wq_weight, wk_weight, wv_weight, *,
                      block_b=None, block_q=None, use_bf16=False):
    """x: (B, S, D) f32; w*_weight: (D, D) nn.Linear weights (out, in), no bias.

    Returns (z (B, S, D), attn (B, S, S)) matching SH_SelfAttention.forward.
    """
    B, S, D = x.shape
    x = x.astype(jnp.float32)

    vmem_cap, n_cores = _tpu_info()

    # Pad S to the f32 sublane multiple so in-kernel reshapes stay free.
    s_pad = ((S + 7) // 8) * 8
    if s_pad != S:
        x = jnp.pad(x, ((0, 0), (0, s_pad - S), (0, 0)))

    bb, tq = _plan_blocks(B, s_pad, D, vmem_cap, n_cores)
    if block_b is not None:
        bb = block_b
    if block_q is not None:
        tq = block_q
    assert B % bb == 0, "block_b must divide batch"
    assert s_pad % tq == 0 and (tq % 8 == 0), "block_q must divide padded S and be a multiple of 8"
    nq = s_pad // tq

    # Fused projection weight; the two-sided d^-0.25 scaling == 1/sqrt(D),
    # folded once into the query columns.
    scale = 1.0 / float(D) ** 0.5
    w_fused = jnp.concatenate(
        [wq_weight.T * scale, wk_weight.T, wv_weight.T], axis=1
    ).astype(jnp.float32)                                   # (D, 3D)

    # Lane-dense output slabs (only when legal: single query tile and a
    # sublane-valid batch block) -- avoids masked vst.msk partial stores.
    dense_ok = (nq == 1) and (bb == B or bb % 8 == 0)
    flatten_attn = (s_pad % 128 != 0) and dense_ok
    flatten_z = (D % 128 != 0) and dense_ok

    if flatten_attn:
        attn_shape = (B, s_pad * s_pad)
        attn_spec = pl.BlockSpec((bb, tq * s_pad), lambda b, q: (b, q))
    else:
        attn_shape = (B, s_pad, s_pad)
        attn_spec = pl.BlockSpec((bb, tq, s_pad), lambda b, q: (b, q, 0))
    if flatten_z:
        z_shape = (B, s_pad * D)
        z_spec = pl.BlockSpec((bb, tq * D), lambda b, q: (b, q))
    else:
        z_shape = (B, s_pad, D)
        z_spec = pl.BlockSpec((bb, tq, D), lambda b, q: (b, q, 0))

    kernel = functools.partial(
        _sh_self_attn_kernel, tq=tq, s_len=S,
        flatten_attn=flatten_attn, flatten_z=flatten_z, use_bf16=use_bf16)

    def build(single_buffer_weight):
        w_kwargs = {}
        if single_buffer_weight:
            # Resident weight: its block index never changes, so double
            # buffering only wastes VMEM (matters at large D on v7x).
            w_kwargs = dict(pipeline_mode=pl.Buffered(1))
        return pl.pallas_call(
            kernel,
            out_shape=(
                jax.ShapeDtypeStruct(z_shape, jnp.float32),
                jax.ShapeDtypeStruct(attn_shape, jnp.float32),
            ),
            grid_spec=pltpu.PrefetchScalarGridSpec(
                num_scalar_prefetch=0,
                grid=(B // bb, nq),
                in_specs=[
                    pl.BlockSpec((bb, s_pad, D), lambda b, q: (b, 0, 0)),   # X block
                    pl.BlockSpec((D, 3 * D), lambda b, q: (0, 0), **w_kwargs),
                ],
                out_specs=[z_spec, attn_spec],
                scratch_shapes=[
                    pltpu.VMEM((bb, s_pad, D), jnp.float32),   # q scratch
                    pltpu.VMEM((bb, s_pad, D), jnp.float32),   # k scratch
                    pltpu.VMEM((bb, s_pad, D), jnp.float32),   # v scratch
                ],
            ),
            compiler_params=pltpu.CompilerParams(
                dimension_semantics=("parallel", "arbitrary"),
                vmem_limit_bytes=int(vmem_cap * 3 // 4),
            ),
        )

    try:
        z, attn = build(True)(x, w_fused)
    except Exception:
        # Fallback if this runtime rejects single-buffered pipeline_mode.
        z, attn = build(False)(x, w_fused)

    if flatten_attn:
        attn = attn.reshape(B, s_pad, s_pad)
    if flatten_z:
        z = z.reshape(B, s_pad, D)
    if s_pad != S:
        attn = attn[:, :S, :S]
        z = z[:, :S, :]
    return z, attn


# --------------------------------------------------------------------------- #
# Pure-JAX reference (port of SH_SelfAttention.forward, HIGHEST precision)
# --------------------------------------------------------------------------- #
def _reference(x, wq_weight, wk_weight, wv_weight):
    d = x.shape[-1]
    hp = jax.lax.Precision.HIGHEST
    xq = jnp.einsum("bsd,od->bso", x, wq_weight, precision=hp)
    xk = jnp.einsum("bsd,od->bso", x, wk_weight, precision=hp)
    xv = jnp.einsum("bsd,od->bso", x, wv_weight, precision=hp)
    scores = jnp.einsum("bqd,bkd->bqk", xq / d ** 0.25, xk / d ** 0.25, precision=hp)
    attn = jax.nn.softmax(scores, axis=-1)
    z = jnp.einsum("bqk,bkd->bqd", attn, xv, precision=hp)
    return z, attn


if __name__ == "__main__":
    B, S, D = 2, 8, 32  # (batch, sequence length, input_size)
    key = jax.random.PRNGKey(0)
    kx, kq, kk, kv = jax.random.split(key, 4)
    x = jax.random.normal(kx, (B, S, D), dtype=jnp.float32)
    # nn.Linear-style weight scale keeps logits well-conditioned.
    wq = jax.random.normal(kq, (D, D), dtype=jnp.float32) / jnp.sqrt(jnp.float32(D))
    wk = jax.random.normal(kk, (D, D), dtype=jnp.float32) / jnp.sqrt(jnp.float32(D))
    wv = jax.random.normal(kv, (D, D), dtype=jnp.float32) / jnp.sqrt(jnp.float32(D))

    z, attn = sh_self_attention(x, wq, wk, wv)
    jax.block_until_ready((z, attn))

    z_ref, attn_ref = _reference(x, wq, wk, wv)
    assert z.shape == (B, S, D) and attn.shape == (B, S, S), "bad output shapes"
    assert jnp.allclose(attn, attn_ref, atol=1e-4, rtol=1e-4), "attn mismatch"
    assert jnp.allclose(z, z_ref, atol=1e-4, rtol=1e-4), "z mismatch"
    assert jnp.allclose(jnp.sum(attn, axis=-1), 1.0, atol=1e-5), "softmax rows not normalized"

    print("KERNEL_OK")
</pallas_src>

<mosaic_0001>
module attributes {stable_mosaic.version = 11 : i64} {
  func.func @_sh_self_attn_kernel(%arg0: i32, %arg1: i32, %arg2: memref<2x8x32xf32, #tpu.memory_space<vmem>>, %arg3: memref<32x96xf32, #tpu.memory_space<vmem>>, %arg4: memref<2x256xf32, #tpu.memory_space<vmem>>, %arg5: memref<2x64xf32, #tpu.memory_space<vmem>>, %arg6: memref<2x8x32xf32, #tpu.memory_space<vmem>>, %arg7: memref<2x8x32xf32, #tpu.memory_space<vmem>>, %arg8: memref<2x8x32xf32, #tpu.memory_space<vmem>>) attributes {dimension_semantics = [#tpu.dimension_semantics<parallel>, #tpu.dimension_semantics<arbitrary>], iteration_bounds = array<i64: 1, 1>, scalar_prefetch = 0 : i64, scratch_operands = 3 : i64, tpu.core_type = #tpu.core_type<tc>, window_params = [{transform_indices = @transform_0, window_bounds = array<i64: 2, 8, 32>}, {pipeline_mode = #tpu.pipeline_mode<synchronous>, transform_indices = @transform_1, window_bounds = array<i64: 32, 96>}, {transform_indices = @transform_2, window_bounds = array<i64: 2, 256>}, {transform_indices = @transform_3, window_bounds = array<i64: 2, 64>}]} {
    %c0_i32 = arith.constant 0 : i32
    %0 = arith.cmpi eq, %arg1, %c0_i32 : i32
    %1 = arith.extui %0 : i1 to i32
    %c0_i32_0 = arith.constant 0 : i32
    %2 = arith.cmpi ne, %1, %c0_i32_0 : i32
    scf.if %2 {
      %c0_15 = arith.constant 0 : index
      %c0_16 = arith.constant 0 : index
      %c0_17 = arith.constant 0 : index
      %25 = vector.load %arg2[%c0_15, %c0_16, %c0_17] : memref<2x8x32xf32, #tpu.memory_space<vmem>>, vector<2x8x32xf32>
      %26 = vector.shape_cast %25 : vector<2x8x32xf32> to vector<16x32xf32>
      %c0_18 = arith.constant 0 : index
      %c0_19 = arith.constant 0 : index
      %27 = vector.load %arg3[%c0_18, %c0_19] : memref<32x96xf32, #tpu.memory_space<vmem>>, vector<32x96xf32>
      %28 = vector.extract_strided_slice %27 {offsets = [0, 0], sizes = [32, 32], strides = [1, 1]} : vector<32x96xf32> to vector<32x32xf32>
      %cst_20 = arith.constant dense<0.000000e+00> : vector<16x32xf32>
      %29 = tpu.matmul %26, %28, %cst_20 {dimension_numbers = #tpu.dot_dimension_numbers<[1], [0], [0], [1], [0, 0, 1, 1], [], []>} : vector<16x32xf32>, vector<32x32xf32>, vector<16x32xf32> -> vector<16x32xf32>
      %30 = vector.extract_strided_slice %27 {offsets = [0, 32], sizes = [32, 32], strides = [1, 1]} : vector<32x96xf32> to vector<32x32xf32>
      %cst_21 = arith.constant dense<0.000000e+00> : vector<16x32xf32>
      %31 = tpu.matmul %26, %30, %cst_21 {dimension_numbers = #tpu.dot_dimension_numbers<[1], [0], [0], [1], [0, 0, 1, 1], [], []>} : vector<16x32xf32>, vector<32x32xf32>, vector<16x32xf32> -> vector<16x32xf32>
      %32 = vector.extract_strided_slice %27 {offsets = [0, 64], sizes = [32, 32], strides = [1, 1]} : vector<32x96xf32> to vector<32x32xf32>
      %cst_22 = arith.constant dense<0.000000e+00> : vector<16x32xf32>
      %33 = tpu.matmul %26, %32, %cst_22 {dimension_numbers = #tpu.dot_dimension_numbers<[1], [0], [0], [1], [0, 0, 1, 1], [], []>} : vector<16x32xf32>, vector<32x32xf32>, vector<16x32xf32> -> vector<16x32xf32>
      %34 = vector.shape_cast %29 : vector<16x32xf32> to vector<2x8x32xf32>
      %c0_23 = arith.constant 0 : index
      %c0_24 = arith.constant 0 : index
      %c0_25 = arith.constant 0 : index
      %35 = vector.load %arg6[%c0_23, %c0_24, %c0_25] : memref<2x8x32xf32, #tpu.memory_space<vmem>>, vector<2x8x32xf32>
      tpu.vector_store %arg6[%c0_23, %c0_24, %c0_25], %34 {strides = array<i32>} : memref<2x8x32xf32, #tpu.memory_space<vmem>>, vector<2x8x32xf32>,
      %36 = vector.shape_cast %31 : vector<16x32xf32> to vector<2x8x32xf32>
      %c0_26 = arith.constant 0 : index
      %c0_27 = arith.constant 0 : index
      %c0_28 = arith.constant 0 : index
      %37 = vector.load %arg7[%c0_26, %c0_27, %c0_28] : memref<2x8x32xf32, #tpu.memory_space<vmem>>, vector<2x8x32xf32>
      tpu.vector_store %arg7[%c0_26, %c0_27, %c0_28], %36 {strides = array<i32>} : memref<2x8x32xf32, #tpu.memory_space<vmem>>, vector<2x8x32xf32>,
      %38 = vector.shape_cast %33 : vector<16x32xf32> to vector<2x8x32xf32>
      %c0_29 = arith.constant 0 : index
      %c0_30 = arith.constant 0 : index
      %c0_31 = arith.constant 0 : index
      %39 = vector.load %arg8[%c0_29, %c0_30, %c0_31] : memref<2x8x32xf32, #tpu.memory_space<vmem>>, vector<2x8x32xf32>
      tpu.vector_store %arg8[%c0_29, %c0_30, %c0_31], %38 {strides = array<i32>} : memref<2x8x32xf32, #tpu.memory_space<vmem>>, vector<2x8x32xf32>,
    } else {
    }
    %c8_i32 = arith.constant 8 : i32
    %3 = arith.muli %arg1, %c8_i32 : i32
    %4 = tpu.assume_multiple %3, 8 : i32
    %c0 = arith.constant 0 : index
    %5 = arith.index_cast %4 : i32 to index
    %c0_1 = arith.constant 0 : index
    %6 = vector.load %arg6[%c0, %5, %c0_1] : memref<2x8x32xf32, #tpu.memory_space<vmem>>, vector<2x8x32xf32>
    %c0_2 = arith.constant 0 : index
    %c0_3 = arith.constant 0 : index
    %c0_4 = arith.constant 0 : index
    %7 = vector.load %arg7[%c0_2, %c0_3, %c0_4] : memref<2x8x32xf32, #tpu.memory_space<vmem>>, vector<2x8x32xf32>
    %c0_5 = arith.constant 0 : index
    %c0_6 = arith.constant 0 : index
    %c0_7 = arith.constant 0 : index
    %8 = vector.load %arg8[%c0_5, %c0_6, %c0_7] : memref<2x8x32xf32, #tpu.memory_space<vmem>>, vector<2x8x32xf32>
    "tpu.trace_start"() <{level = 10 : i32, message = "bqd,bkd->bqk"}> : () -> ()
    %cst = arith.constant dense<0.000000e+00> : vector<2x8x8xf32>
    %9 = tpu.matmul %6, %7, %cst {dimension_numbers = #tpu.dot_dimension_numbers<[2], [2], [1], [1], [0, 0, 0, 1, 1, 1], [0], [0]>} : vector<2x8x32xf32>, vector<2x8x32xf32>, vector<2x8x8xf32> -> vector<2x8x8xf32>
    "tpu.trace_stop"() : () -> ()
    %cst_8 = arith.constant dense<0xFF800000> : vector<2x8xf32>
    %10 = vector.multi_reduction <maximumf>, %9, %cst_8 [2] : vector<2x8x8xf32> to vector<2x8xf32>
    %11 = vector.shape_cast %10 : vector<2x8xf32> to vector<2x8x1xf32>
    %12 = vector.broadcast %11 : vector<2x8x1xf32> to vector<2x8x8xf32>
    %13 = arith.subf %9, %12 : vector<2x8x8xf32>
    %14 = math.exp %13 : vector<2x8x8xf32>
    %cst_9 = arith.constant dense<0.000000e+00> : vector<2x8xf32>
    %15 = vector.multi_reduction <add>, %14, %cst_9 [2] : vector<2x8x8xf32> to vector<2x8xf32>
    %16 = vector.shape_cast %15 : vector<2x8xf32> to vector<2x8x1xf32>
    %17 = tpu.reciprocal %16 : vector<2x8x1xf32> -> vector<2x8x1xf32>
    %18 = vector.broadcast %17 : vector<2x8x1xf32> to vector<2x8x8xf32>
    %19 = arith.mulf %14, %18 : vector<2x8x8xf32>
    "tpu.trace_start"() <{level = 10 : i32, message = "bqk,bkd->bqd"}> : () -> ()
    %cst_10 = arith.constant dense<0.000000e+00> : vector<2x8x32xf32>
    %20 = tpu.matmul %19, %8, %cst_10 {dimension_numbers = #tpu.dot_dimension_numbers<[2], [1], [1], [2], [0, 0, 0, 1, 1, 2], [0], [0]>} : vector<2x8x8xf32>, vector<2x8x32xf32>, vector<2x8x32xf32> -> vector<2x8x32xf32>
    "tpu.trace_stop"() : () -> ()
    %21 = vector.shape_cast %19 : vector<2x8x8xf32> to vector<2x64xf32>
    %c0_11 = arith.constant 0 : index
    %c0_12 = arith.constant 0 : index
    %22 = vector.load %arg5[%c0_11, %c0_12] : memref<2x64xf32, #tpu.memory_space<vmem>>, vector<2x64xf32>
    tpu.vector_store %arg5[%c0_11, %c0_12], %21 {strides = array<i32>} : memref<2x64xf32, #tpu.memory_space<vmem>>, vector<2x64xf32>,
    %23 = vector.shape_cast %20 : vector<2x8x32xf32> to vector<2x256xf32>
    %c0_13 = arith.constant 0 : index
    %c0_14 = arith.constant 0 : index
    %24 = vector.load %arg4[%c0_13, %c0_14] : memref<2x256xf32, #tpu.memory_space<vmem>>, vector<2x256xf32>
    tpu.vector_store %arg4[%c0_13, %c0_14], %23 {strides = array<i32>} : memref<2x256xf32, #tpu.memory_space<vmem>>, vector<2x256xf32>,
    return
  }
  func.func @transform_0(%arg0: i32, %arg1: i32) -> (i32, i32, i32) {
    %c0_i32 = arith.constant 0 : i32
    %c0_i32_0 = arith.constant 0 : i32
    %c0_i32_1 = arith.constant 0 : i32
    return %arg0, %c0_i32, %c0_i32_0 : i32, i32, i32
  }
  func.func @transform_1(%arg0: i32, %arg1: i32) -> (i32, i32) {
    %c0_i32 = arith.constant 0 : i32
    %c0_i32_0 = arith.constant 0 : i32
    %c0_i32_1 = arith.constant 0 : i32
    return %c0_i32, %c0_i32_0 : i32, i32
  }
  func.func @transform_2(%arg0: i32, %arg1: i32) -> (i32, i32) {
    %c0_i32 = arith.constant 0 : i32
    return %arg0, %arg1 : i32, i32
  }
  func.func @transform_3(%arg0: i32, %arg1: i32) -> (i32, i32) {
    %c0_i32 = arith.constant 0 : i32
    return %arg0, %arg1 : i32, i32
  }
}

module attributes {stable_mosaic.version = 11 : i64} {
  func.func @_sh_self_attn_kernel(%arg0: i32, %arg1: i32, %arg2: memref<2x8x32xf32, #tpu.memory_space<vmem>>, %arg3: memref<32x96xf32, #tpu.memory_space<vmem>>, %arg4: memref<2x256xf32, #tpu.memory_space<vmem>>, %arg5: memref<2x64xf32, #tpu.memory_space<vmem>>, %arg6: memref<2x8x32xf32, #tpu.memory_space<vmem>>, %arg7: memref<2x8x32xf32, #tpu.memory_space<vmem>>, %arg8: memref<2x8x32xf32, #tpu.memory_space<vmem>>) attributes {dimension_semantics = [#tpu.dimension_semantics<parallel>, #tpu.dimension_semantics<arbitrary>], iteration_bounds = array<i64: 1, 1>, scalar_prefetch = 0 : i64, scratch_operands = 3 : i64, tpu.core_type = #tpu.core_type<tc>, window_params = [{transform_indices = @transform_0, window_bounds = array<i64: 2, 8, 32>}, {pipeline_mode = #tpu.pipeline_mode<synchronous>, transform_indices = @transform_1, window_bounds = array<i64: 32, 96>}, {transform_indices = @transform_2, window_bounds = array<i64: 2, 256>}, {transform_indices = @transform_3, window_bounds = array<i64: 2, 64>}]} {
    %c0_i32 = arith.constant 0 : i32
    %0 = arith.cmpi eq, %arg1, %c0_i32 : i32
    %1 = arith.extui %0 : i1 to i32
    %c0_i32_0 = arith.constant 0 : i32
    %2 = arith.cmpi ne, %1, %c0_i32_0 : i32
    scf.if %2 {
      %c0_15 = arith.constant 0 : index
      %c0_16 = arith.constant 0 : index
      %c0_17 = arith.constant 0 : index
      %25 = vector.load %arg2[%c0_15, %c0_16, %c0_17] : memref<2x8x32xf32, #tpu.memory_space<vmem>>, vector<2x8x32xf32>
      %26 = vector.shape_cast %25 : vector<2x8x32xf32> to vector<16x32xf32>
      %c0_18 = arith.constant 0 : index
      %c0_19 = arith.constant 0 : index
      %27 = vector.load %arg3[%c0_18, %c0_19] : memref<32x96xf32, #tpu.memory_space<vmem>>, vector<32x96xf32>
      %28 = vector.extract_strided_slice %27 {offsets = [0, 0], sizes = [32, 32], strides = [1, 1]} : vector<32x96xf32> to vector<32x32xf32>
      %cst_20 = arith.constant dense<0.000000e+00> : vector<16x32xf32>
      %29 = tpu.matmul %26, %28, %cst_20 {dimension_numbers = #tpu.dot_dimension_numbers<[1], [0], [0], [1], [0, 0, 1, 1], [], []>} : vector<16x32xf32>, vector<32x32xf32>, vector<16x32xf32> -> vector<16x32xf32>
      %30 = vector.extract_strided_slice %27 {offsets = [0, 32], sizes = [32, 32], strides = [1, 1]} : vector<32x96xf32> to vector<32x32xf32>
      %cst_21 = arith.constant dense<0.000000e+00> : vector<16x32xf32>
      %31 = tpu.matmul %26, %30, %cst_21 {dimension_numbers = #tpu.dot_dimension_numbers<[1], [0], [0], [1], [0, 0, 1, 1], [], []>} : vector<16x32xf32>, vector<32x32xf32>, vector<16x32xf32> -> vector<16x32xf32>
      %32 = vector.extract_strided_slice %27 {offsets = [0, 64], sizes = [32, 32], strides = [1, 1]} : vector<32x96xf32> to vector<32x32xf32>
      %cst_22 = arith.constant dense<0.000000e+00> : vector<16x32xf32>
      %33 = tpu.matmul %26, %32, %cst_22 {dimension_numbers = #tpu.dot_dimension_numbers<[1], [0], [0], [1], [0, 0, 1, 1], [], []>} : vector<16x32xf32>, vector<32x32xf32>, vector<16x32xf32> -> vector<16x32xf32>
      %34 = vector.shape_cast %29 : vector<16x32xf32> to vector<2x8x32xf32>
      %c0_23 = arith.constant 0 : index
      %c0_24 = arith.constant 0 : index
      %c0_25 = arith.constant 0 : index
      %35 = vector.load %arg6[%c0_23, %c0_24, %c0_25] : memref<2x8x32xf32, #tpu.memory_space<vmem>>, vector<2x8x32xf32>
      tpu.vector_store %arg6[%c0_23, %c0_24, %c0_25], %34 {strides = array<i32>} : memref<2x8x32xf32, #tpu.memory_space<vmem>>, vector<2x8x32xf32>,
      %36 = vector.shape_cast %31 : vector<16x32xf32> to vector<2x8x32xf32>
      %c0_26 = arith.constant 0 : index
      %c0_27 = arith.constant 0 : index
      %c0_28 = arith.constant 0 : index
      %37 = vector.load %arg7[%c0_26, %c0_27, %c0_28] : memref<2x8x32xf32, #tpu.memory_space<vmem>>, vector<2x8x32xf32>
      tpu.vector_store %arg7[%c0_26, %c0_27, %c0_28], %36 {strides = array<i32>} : memref<2x8x32xf32, #tpu.memory_space<vmem>>, vector<2x8x32xf32>,
      %38 = vector.shape_cast %33 : vector<16x32xf32> to vector<2x8x32xf32>
      %c0_29 = arith.constant 0 : index
      %c0_30 = arith.constant 0 : index
      %c0_31 = arith.constant 0 : index
      %39 = vector.load %arg8[%c0_29, %c0_30, %c0_31] : memref<2x8x32xf32, #tpu.memory_space<vmem>>, vector<2x8x32xf32>
      tpu.vector_store %arg8[%c0_29, %c0_30, %c0_31], %38 {strides = array<i32>} : memref<2x8x32xf32, #tpu.memory_space<vmem>>, vector<2x8x32xf32>,
    } else {
    }
    %c8_i32 = arith.constant 8 : i32
    %3 = arith.muli %arg1, %c8_i32 : i32
    %4 = tpu.assume_multiple %3, 8 : i32
    %c0 = arith.constant 0 : index
    %5 = arith.index_cast %4 : i32 to index
    %c0_1 = arith.constant 0 : index
    %6 = vector.load %arg6[%c0, %5, %c0_1] : memref<2x8x32xf32, #tpu.memory_space<vmem>>, vector<2x8x32xf32>
    %c0_2 = arith.constant 0 : index
    %c0_3 = arith.constant 0 : index
    %c0_4 = arith.constant 0 : index
    %7 = vector.load %arg7[%c0_2, %c0_3, %c0_4] : memref<2x8x32xf32, #tpu.memory_space<vmem>>, vector<2x8x32xf32>
    %c0_5 = arith.constant 0 : index
    %c0_6 = arith.constant 0 : index
    %c0_7 = arith.constant 0 : index
    %8 = vector.load %arg8[%c0_5, %c0_6, %c0_7] : memref<2x8x32xf32, #tpu.memory_space<vmem>>, vector<2x8x32xf32>
    "tpu.trace_start"() <{level = 10 : i32, message = "bqd,bkd->bqk"}> : () -> ()
    %cst = arith.constant dense<0.000000e+00> : vector<2x8x8xf32>
    %9 = tpu.matmul %6, %7, %cst {dimension_numbers = #tpu.dot_dimension_numbers<[2], [2], [1], [1], [0, 0, 0, 1, 1, 1], [0], [0]>} : vector<2x8x32xf32>, vector<2x8x32xf32>, vector<2x8x8xf32> -> vector<2x8x8xf32>
    "tpu.trace_stop"() : () -> ()
    %cst_8 = arith.constant dense<0xFF800000> : vector<2x8xf32>
    %10 = vector.multi_reduction <maximumf>, %9, %cst_8 [2] : vector<2x8x8xf32> to vector<2x8xf32>
    %11 = vector.shape_cast %10 : vector<2x8xf32> to vector<2x8x1xf32>
    %12 = vector.broadcast %11 : vector<2x8x1xf32> to vector<2x8x8xf32>
    %13 = arith.subf %9, %12 : vector<2x8x8xf32>
    %14 = math.exp %13 : vector<2x8x8xf32>
    %cst_9 = arith.constant dense<0.000000e+00> : vector<2x8xf32>
    %15 = vector.multi_reduction <add>, %14, %cst_9 [2] : vector<2x8x8xf32> to vector<2x8xf32>
    %16 = vector.shape_cast %15 : vector<2x8xf32> to vector<2x8x1xf32>
    %17 = tpu.reciprocal %16 : vector<2x8x1xf32> -> vector<2x8x1xf32>
    %18 = vector.broadcast %17 : vector<2x8x1xf32> to vector<2x8x8xf32>
    %19 = arith.mulf %14, %18 : vector<2x8x8xf32>
    "tpu.trace_start"() <{level = 10 : i32, message = "bqk,bkd->bqd"}> : () -> ()
    %cst_10 = arith.constant dense<0.000000e+00> : vector<2x8x32xf32>
    %20 = tpu.matmul %19, %8, %cst_10 {dimension_numbers = #tpu.dot_dimension_numbers<[2], [1], [1], [2], [0, 0, 0, 1, 1, 2], [0], [0]>} : vector<2x8x8xf32>, vector<2x8x32xf32>, vector<2x8x32xf32> -> vector<2x8x32xf32>
    "tpu.trace_stop"() : () -> ()
    %21 = vector.shape_cast %19 : vector<2x8x8xf32> to vector<2x64xf32>
    %c0_11 = arith.constant 0 : index
    %c0_12 = arith.constant 0 : index
    %22 = vector.load %arg5[%c0_11, %c0_12] : memref<2x64xf32, #tpu.memory_space<vmem>>, vector<2x64xf32>
    tpu.vector_store %arg5[%c0_11, %c0_12], %21 {strides = array<i32>} : memref<2x64xf32, #tpu.memory_space<vmem>>, vector<2x64xf32>,
    %23 = vector.shape_cast %20 : vector<2x8x32xf32> to vector<2x256xf32>
    %c0_13 = arith.constant 0 : index
    %c0_14 = arith.constant 0 : index
    %24 = vector.load %arg4[%c0_13, %c0_14] : memref<2x256xf32, #tpu.memory_space<vmem>>, vector<2x256xf32>
    tpu.vector_store %arg4[%c0_13, %c0_14], %23 {strides = array<i32>} : memref<2x256xf32, #tpu.memory_space<vmem>>, vector<2x256xf32>,
    return
  }
  func.func @transform_0(%arg0: i32, %arg1: i32) -> (i32, i32, i32) {
    %c0_i32 = arith.constant 0 : i32
    %c0_i32_0 = arith.constant 0 : i32
    %c0_i32_1 = arith.constant 0 : i32
    return %arg0, %c0_i32, %c0_i32_0 : i32, i32, i32
  }
  func.func @transform_1(%arg0: i32, %arg1: i32) -> (i32, i32) {
    %c0_i32 = arith.constant 0 : i32
    %c0_i32_0 = arith.constant 0 : i32
    %c0_i32_1 = arith.constant 0 : i32
    return %c0_i32, %c0_i32_0 : i32, i32
  }
  func.func @transform_2(%arg0: i32, %arg1: i32) -> (i32, i32) {
    %c0_i32 = arith.constant 0 : i32
    return %arg0, %arg1 : i32, i32
  }
  func.func @transform_3(%arg0: i32, %arg1: i32) -> (i32, i32) {
    %c0_i32 = arith.constant 0 : i32
    return %arg0, %arg1 : i32, i32
  }
}

</mosaic_0001>

<bundles_post_ra>
// kernel: tpu_custom_call.1
= control target key start
LH: loop header
LB: loop body
LE: loop exit
PB: predicated region body
PF: predicated region fallthrough
CT: control target
= control target key end

     0   :  { %9 = vsyncpa [#allocation6], 0  ;;  %s1219_s0 = inlined_call_operand.hbm [shape: f32[2,8,32], index: 0, kind: input, shape index: {}]   ;;  %s1220_s1 = inlined_call_operand.hbm [shape: f32[32,96], index: 1, kind: input, shape index: {}]   ;;  %s1221_s2 = inlined_call_operand.hbm [shape: f32[2,256], index: 2, kind: output, shape index: {0}]   ;;  %s1222_s3 = inlined_call_operand.hbm [shape: f32[2,64], index: 3, kind: output, shape index: {1}]  }
   0x1   :  { %10 = vsyncpa [#allocation9], 0 }
   0x2   :  { %11 = vsyncpa [#allocation7], 0 }
   0x3   :  { %12 = vsyncpa [#allocation12], 0  ;;  %s1103_s12 = smov [#allocation5]  }
   0x4   :  { %s18_s13 = sshll.u32 %s1103_s12, 4  ;;  %s19_s13 = int_to_ptr.vmem [resolvable:$true] %s18_s13 }
   0x5   :  { %s1023_s14 = scalar_lea.vmem %s19_s13, 256  ;;  %p1028_p1 = scmp.lt.s32.totalorder %s19_s13, %s19_s13 }
   0x6   :  { %p1024_p0 = scmp.ne.s32.totalorder %s19_s13, %s1023_s14  ;;  %p1029_p2 = scmp.lt.s32.totalorder %s1023_s14, %s1023_s14 }
   0x8   :  { %p1030_p3 = por %p1029_p2, %p1028_p1 }
   0xa   :  { %p1031_p4 = pnand %p1030_p3, %p1024_p0 }
   0xc   :  { %1034 = shalt.err (!%p1031_p4)
}
   0xd   :  { %s1104_s15 = smov 128   ;;  %s1105_s16 = smov 8  }
   0xe   :  { %24 = dma.hbm_to_vmem [thread:$0]  %s1219_s0, 256, %s19_s13, [#allocation6], %s1104_s15, %s1104_s15, %s1105_s16  }
   0xf   :  { %s1106_s19 = smov [#allocation8]  }
  0x10   :  { %s30_s20 = sshll.u32 %s1106_s19, 4  ;;  %s31_s20 = int_to_ptr.vmem [resolvable:$true] %s30_s20 }
  0x11   :  { %s1043_s21 = scalar_lea.vmem %s31_s20, 512  ;;  %p1048_p6 = scmp.lt.s32.totalorder %s31_s20, %s31_s20 }
  0x12   :  { %p1044_p5 = scmp.ne.s32.totalorder %s31_s20, %s1043_s21  ;;  %p1049_p7 = scmp.lt.s32.totalorder %s1043_s21, %s1043_s21 }
  0x14   :  { %p1050_p8 = por %p1049_p7, %p1048_p6 }
  0x16   :  { %p1051_p9 = pnand %p1050_p8, %p1044_p5 }
  0x18   :  { %1054 = shalt.err (!%p1051_p9)
}
  0x19   :  { %36 = dma.hbm_to_vmem [thread:$0]  %s1220_s1, 512, %s31_s20, [#allocation9], %s1104_s15, %s1104_s15, %s1105_s16  }
  0x1a   :  { %1095 = dma.done.wait [#allocation6], 256  }
  0x1b   :  { %1096 = vsyncadd [#allocation6], 4294967040 }
  0x1c   :  { %1097 = dma.done.wait [#allocation9], 512  }
  0x1d   :  { %1098 = vsyncadd [#allocation9], 4294966784  ;;  %vm53_vm0 = vcmask 261120   ;;  %v52_v0 = vld [vmem:[#allocation8 + $0x18] sm:$0xff]  ;;  %v50_v1 = vld [vmem:[#allocation8 + $0x8] sm:$0xff]  ;;  %s1107_s0 = smov 96   ;;  %v653_v47 = vlaneseq }
  0x1e   :  { %145 = vrot.lane.b32.xlu0 %v52_v0, %s1107_s0  ;;  %141 = vrot.lane.b32.xlu1 %v50_v1, %s1107_s0  ;;  %v47_v2 = vld [vmem:[#allocation5] sm:$0xff]  ;;  %v49_v4 = vld [vmem:[#allocation8] sm:$0xff]  ;;  %v48_v5 = vld [vmem:[#allocation5 + $0x8] sm:$0xff]  ;;  %v1108_v10 = vmov 0.0   ;;  %vm1109_vm1 = vmmov 0   ;;  %s1110_s1 = smov 64  }
  0x1f   :  { %v51_v3 = vld [vmem:[#allocation8 + $0x10] sm:$0xff]  ;;  %936 = vmatprep.subr.mxu0 %v52_v0  ;;  %955 = vmatprep.mubr.msk.f32.mxu1 %vm53_vm0, %v47_v2  ;;  %vm480_vm2 = vcmask 64512   ;;  %v1111_v45 = vmov 1983009808   ;;  %v654_v49 = vshrl.u32 %v653_v47, 7  ;;  %s1113_s24 = smov 16  }
  0x20   :  { %937 = vmatpush3.msra.mxu0 %v52_v0  ;;  %944 = vmatprep.mubr.msk.f32.mxu0 %vm53_vm0, %v47_v2  ;;  %v651_v46 = vunpack.c.l.s4 %v1111_v45  ;;  %v1112_v50 = vmov 1934713408   ;;  %s1114_s25 = smov 40   ;;  %s1115_s26 = smov 24   ;;  %vm744_vm3 = vcmask 130048   ;;  %vm746_vm4 = vcmask 195584  }
  0x21   :  { %938 = vmatprep.subr.mxu0 %v51_v3  ;;  %v682_v51 = vunpack.c.l.s4 %v1112_v50  ;;  %s1116_s27 = smov 32   ;;  %s1117_s28 = smov 56   ;;  %vm848_vm5 = vcmask 523264   ;;  %vm850_vm6 = vcmask 785408   ;;  %vm749_vm7 = vcmask 326656  }
  0x22   :  { %143 = vrot.lane.b32.xlu0 %v51_v3, %s1107_s0  ;;  %139 = vrot.lane.b32.xlu1 %v49_v4, %s1107_s0  ;;  %v652_v48 = vunpack.c.0.s8 %v651_v46  ;;  %s1118_s29 = smov 48   ;;  %s1119_s30 = smov [#allocation10]   ;;  %vm751_vm8 = vcmask 392192   ;;  %vm753_vm9 = vcmask 457728   ;;  %vm755_vm10 = vcmask 517120  }
  0x23   :  { %939 = vmatpush3.msra.mxu0 %v51_v3  ;;  %v683_v55 = vunpack.c.0.s8 %v682_v51  ;;  %s873_s4 = sshll.u32 %s1119_s30, 4  ;;  %s1120_s5 = smov [#allocation11]   ;;  %s874_s4 = int_to_ptr.vmem [resolvable:$true] %s873_s4 }
  0x24   :  { %940 = vmatprep.subr.mxu0 %v50_v1  ;;  %v655_v54 = vsub.s32 %v652_v48, %v654_v49  ;;  %s883_s6 = sshll.u32 %s1120_s5, 4  ;;  %s1055_s7 = scalar_lea.vmem %s874_s4, 64  ;;  %s884_s6 = int_to_ptr.vmem [resolvable:$true] %s883_s6 }
  0x25   :  { %941 = vmatpush3.msra.mxu0 %v50_v1  ;;  %v686_v61 = vsub.s32 %v683_v55, %v654_v49  ;;  %p1056_p10 = scmp.ne.s32.totalorder %s874_s4, %s1055_s7  ;;  %p1060_p11 = scmp.lt.s32.totalorder %s874_s4, %s874_s4 }
  0x26   :  { %942 = vmatprep.subr.mxu0 %v49_v4  ;;  %232 = vrot.lane.b32.xlu0 %v52_v0, %s1110_s1  ;;  %p1061_p12 = scmp.lt.s32.totalorder %s1055_s7, %s1055_s7 }
  0x27   :  { %943 = vmatpush3.msra.mxu0 %v49_v4  ;;  %230 = vrot.lane.b32.xlu1 %v51_v3, %s1110_s1 }
  0x28   :  { %945 = vmatmul.mubr.msk.f32.vlgmr.msra.gmra.mxu0 %vm53_vm0, %v48_v5  ;;  %p1062_p13 = por %p1061_p12, %p1060_p11 }
  0x29   :  { %966 = vmatprep.mubr.msk.f32.mxu0 %vm53_vm0, %v47_v2 }
  0x2a   :  { %228 = vrot.lane.b32.xlu0 %v50_v1, %s1110_s1  ;;  %p1063_p0 = pnand %p1062_p13, %p1056_p10 }
  0x2b   :  { %226 = vrot.lane.b32.xlu1 %v49_v4, %s1110_s1 }
  0x90   :  { %v146_v6 = vpop.permute.xlu0 %145  ;;  %v142_v7 = vpop.permute.xlu1 %141 }
  0x91   :  { %947 = vmatprep.subr.mxu1 %v146_v6 }
  0x92   :  { %948 = vmatpush3.msra.mxu1 %v146_v6 }
  0x94   :  { %v144_v8 = vpop.permute.xlu0 %143  ;;  %v140_v9 = vpop.permute.xlu1 %139 }
  0x95   :  { %949 = vmatprep.subr.mxu1 %v144_v8 }
  0x96   :  { %950 = vmatpush3.msra.mxu1 %v144_v8 }
  0x97   :  { %951 = vmatprep.subr.mxu1 %v142_v7 }
  0x98   :  { %952 = vmatpush3.msra.mxu1 %v142_v7  ;;  %v233_v19 = vpop.permute.xlu0 %232 }
  0x99   :  { %953 = vmatprep.subr.mxu1 %v140_v9  ;;  %v231_v20 = vpop.permute.xlu1 %230  ;;  %958 = vmatprep.subr.mxu0 %v233_v19 }
  0x9a   :  { %954 = vmatpush3.msra.mxu1 %v140_v9  ;;  %959 = vmatpush3.msra.mxu0 %v233_v19 }
  0x9b   :  { %956 = vmatmul.mubr.msk.f32.vlgmr.msra.gmra.mxu1 %vm53_vm0, %v48_v5  ;;  %969 = vmatprep.subr.mxu1 %v1108_v10 }
  0x9c   :  { %971 = vmatprep.mubr.msk.f32.mxu1 %vm1109_vm1, %v1108_v10  ;;  %960 = vmatprep.subr.mxu0 %v231_v20  ;;  %v229_v21 = vpop.permute.xlu0 %228 }
  0x9d   :  { %961 = vmatpush3.msra.mxu0 %v231_v20  ;;  %v227_v22 = vpop.permute.xlu1 %226 }
  0x9e   :  { %962 = vmatprep.subr.mxu0 %v229_v21 }
  0x9f   :  { %963 = vmatpush3.msra.mxu0 %v229_v21 }
  0xa0   :  { %964 = vmatprep.subr.mxu0 %v227_v22 }
  0xa1   :  { %965 = vmatpush3.msra.mxu0 %v227_v22 }
  0xa2   :  { %967 = vmatmul.mubr.msk.f32.vlgmr.msra.gmra.mxu0 %vm53_vm0, %v48_v5  ;;  %979 = vmatprep.subr.mxu0 %v1108_v10 }
  0xa3   :  { %981 = vmatprep.mubr.msk.f32.mxu0 %vm1109_vm1, %v1108_v10 }
  0xe8   :  { %v946_v11 = vpop.f32.mrf.mxu0 }
  0xe9   :  { %314 = vst.msk [vmem:[#allocation2 + $0x8] sm:$0xff] %vm53_vm0, %v946_v11 }
  0xea   :  { %v126_v12 = vpop.f32.mrf.mxu0 }
  0xeb   :  { %313 = vst.msk [vmem:[#allocation2] sm:$0xff] %vm53_vm0, %v126_v12 }
  0xf0   :  { %v322_v18 = vld [vmem:[#allocation2 + $0x8] sm:$0xff] }
  0xf2   :  { %v321_v16 = vld [vmem:[#allocation2] sm:$0xff] }
 0x15b   :  { %v957_v13 = vpop.f32.mrf.mxu1 }
 0x15c   :  { %316 = vst.msk [vmem:[#allocation3 + $0x8] sm:$0xff] %vm53_vm0, %v957_v13 }
 0x15d   :  { %v217_v14 = vpop.f32.mrf.mxu1 }
 0x15e   :  { %315 = vst.msk [vmem:[#allocation3] sm:$0xff] %vm53_vm0, %v217_v14 }
 0x162   :  { %v968_v39 = vpop.f32.mrf.mxu0 }
 0x163   :  { %v324_v17 = vld [vmem:[#allocation3 + $0x8] sm:$0xff]  ;;  %318 = vst.msk [vmem:[#allocation4 + $0x8] sm:$0xff] %vm53_vm0, %v968_v39 }
 0x164   :  { %v304_v40 = vpop.f32.mrf.mxu0 }
 0x165   :  { %v323_v15 = vld [vmem:[#allocation3] sm:$0xff]  ;;  %317 = vst.msk [vmem:[#allocation4] sm:$0xff] %vm53_vm0, %v304_v40 }
 0x166   :  { %970 = vmatpush3.xpose.msk.msra.mxu1 %vm53_vm0, %v323_v15 }
 0x167   :  { %974 = vmatprep.subr.mxu1 %v1108_v10 }
 0x169   :  { %972 = vmatmul.mubr.msk.f32.vlgmr.msra.gmra.mxu1 %vm53_vm0, %v321_v16 }
 0x16a   :  { %975 = vmatpush3.xpose.msk.msra.mxu1 %vm53_vm0, %v324_v17  ;;  %976 = vmatprep.mubr.msk.f32.mxu1 %vm1109_vm1, %v1108_v10  ;;  %v326_v41 = vld [vmem:[#allocation4 + $0x8] sm:$0xff] }
 0x16b   :  { %984 = vmatprep.subr.mxu1 %v1108_v10 }
 0x16c   :  { %v325_v42 = vld [vmem:[#allocation4] sm:$0xff] }
 0x16d   :  { %977 = vmatmul.mubr.msk.f32.vlgmr.msra.gmra.mxu1 %vm53_vm0, %v322_v18  ;;  %980 = vmatpush3.msra.mxu0 %v325_v42 }
 0x16e   :  { %986 = vmatprep.mubr.msk.f32.mxu1 %vm1109_vm1, %v1108_v10  ;;  %985 = vmatpush3.msra.mxu1 %v326_v41 }
 0x229   :  { %v400_v23 = vpop.f32.mrf.mxu1 }
 0x22a   :  { %v481_v24 = vsel %vm480_vm2, %v400_v23, -inf }
 0x22b   :  { %482 = vmax.xlane.f32.xlu0 %v481_v24  ;;  %v973_v25 = vpop.f32.mrf.mxu1 }
 0x22d   :  { %v476_v26 = vpop.f32.mrf.mxu1 }
 0x22e   :  { %v484_v27 = vsel %vm480_vm2, %v476_v26, -inf }
 0x22f   :  { %485 = vmax.xlane.f32.xlu1 %v484_v27  ;;  %v978_v28 = vpop.f32.mrf.mxu1 }
 0x2b4   :  { %v483_v29 = vpop.xlane.xlu0 %482 }
 0x2b5   :  { %v487_v30 = vsub.f32 %v400_v23, %v483_v29 }
 0x2b7   :  { %v489_v31 = vmul.f32 1.442695, %v487_v30 }
 0x2b8   :  { %v486_v32 = vpop.xlane.xlu1 %485 }
 0x2b9   :  { %1007 = vpow2.f32 %v489_v31  ;;  %v488_v33 = vsub.f32 %v476_v26, %v486_v32 }
 0x2bb   :  { %v491_v34 = vmul.f32 1.442695, %v488_v33 }
 0x2bd   :  { %1009 = vpow2.f32 %v491_v34 }
 0x2c6   :  { %v1008_v35 = vpop.eup %1007 }
 0x2c7   :  { %v493_v36 = vsel %vm480_vm2, %v1008_v35, 0.0 }
 0x2c8   :  { %494 = vadd.xlane.f32.xlu0 %v493_v36 }
 0x2ca   :  { %v1010_v37 = vpop.eup %1009 }
 0x2cb   :  { %v496_v38 = vsel %vm480_vm2, %v1010_v37, 0.0 }
 0x2cc   :  { %497 = vadd.xlane.f32.xlu0 %v496_v38 }
 0x351   :  { %v495_v43 = vpop.xlane.xlu0 %494 }
 0x352   :  { %1011 = vrcp.f32 %v495_v43 }
 0x355   :  { %v498_v44 = vpop.xlane.xlu0 %497 }
 0x356   :  { %1013 = vrcp.f32 %v498_v44 }
 0x35f   :  { %v1012_v52 = vpop.eup %1011 }
 0x360   :  { %v501_v53 = vmul.f32 %v1012_v52, %v1008_v35 }
 0x362   :  { %982 = vmatmul.mubr.msk.f32.vlgmr.msra.gmra.mxu0 %vm480_vm2, %v501_v53  ;;  %v649_v58 = vcombine.high %v501_v53, %v1108_v10  ;;  %v656_v59 = vrot.slane %v501_v53, %v655_v54 }
 0x363   :  { %v1014_v56 = vpop.eup %1013 }
 0x364   :  { %v502_v57 = vmul.f32 %v1014_v56, %v1010_v37  ;;  %v663_v1 = vrot.slane %v649_v58, %v655_v54 }
 0x366   :  { %987 = vmatmul.mubr.msk.f32.vlgmr.msra.gmra.mxu1 %vm480_vm2, %v502_v57  ;;  %v671_v60 = vrot.slane %v502_v57, %v655_v54  ;;  %v664_v62 = vcombine.high %v502_v57, %v1108_v10 }
 0x368   :  { %v680_v63 = vcombine.high %v656_v59, %v671_v60  ;;  %v679_v0 = vcombine.low %v656_v59, %v671_v60  ;;  %v678_v2 = vrot.slane %v664_v62, %v655_v54 }
 0x36a   :  { %v694_v3 = vrot.slane %v680_v63, %v686_v61  ;;  %v687_v4 = vrot.slane %v679_v0, %v686_v61  ;;  %v695_v5 = vcombine.low %v663_v1, %v678_v2  ;;  %v696_v6 = vcombine.high %v663_v1, %v678_v2 }
 0x36c   :  { %720 = vrot.lane.b32.xlu0 %v694_v3, %s1113_s24  ;;  %v711_v7 = vcombine.high %v687_v4, %v1108_v10  ;;  %v703_v8 = vrot.slane %v695_v5, %v686_v61  ;;  %v712_v11 = vcombine.high %v694_v3, %v1108_v10  ;;  %v710_v33 = vrot.slane %v696_v6, %v686_v61 }
 0x36e   :  { %716 = vrot.lane.b32.xlu1 %v711_v7, %s1105_s16  ;;  %v713_v9 = vcombine.high %v703_v8, %v1108_v10  ;;  %v714_v35 = vcombine.high %v710_v33, %v1108_v10 }
 0x370   :  { %732 = vrot.lane.b32.xlu0 %v713_v9, %s1114_s25 }
 0x372   :  { %724 = vrot.lane.b32.xlu1 %v712_v11, %s1115_s26 }
 0x376   :  { %728 = vrot.lane.b32.xlu1 %v703_v8, %s1116_s27 }
 0x3de   :  { %v721_v37 = vpop.permute.xlu0 %720 }
 0x3e0   :  { %v717_v36 = vpop.permute.xlu1 %716 }
 0x3e1   :  { %v743_v45 = vsel %vm480_vm2, %v687_v4, %v717_v36 }
 0x3e2   :  { %v733_v39 = vpop.permute.xlu0 %732  ;;  %v745_v49 = vsel %vm744_vm3, %v743_v45, %v721_v37 }
 0x3e4   :  { %v725_v38 = vpop.permute.xlu1 %724 }
 0x3e5   :  { %v747_v50 = vsel %vm746_vm4, %v745_v49, %v725_v38 }
 0x3e8   :  { %v729_v40 = vpop.permute.xlu1 %728 }
 0x3e9   :  { %v748_v53 = vsel %vm53_vm0, %v747_v50, %v729_v40 }
 0x3ea   :  { %v750_v57 = vsel %vm749_vm7, %v748_v53, %v733_v39 }
 0x422   :  { %v572_v12 = vpop.f32.mrf.mxu0 }
 0x423   :  { %v757_v14 = vcombine.high %v572_v12, %v1108_v10  ;;  %v764_v16 = vrot.slane %v572_v12, %v655_v54 }
 0x424   :  { %v983_v13 = vpop.f32.mrf.mxu0 }
 0x425   :  { %v771_v20 = vrot.slane %v757_v14, %v655_v54 }
 0x426   :  { %v645_v15 = vpop.f32.mrf.mxu1 }
 0x427   :  { %v772_v17 = vcombine.high %v645_v15, %v1108_v10  ;;  %v779_v18 = vrot.slane %v645_v15, %v655_v54 }
 0x428   :  { %v988_v19 = vpop.f32.mrf.mxu1 }
 0x429   :  { %v786_v21 = vrot.slane %v772_v17, %v655_v54  ;;  %v787_v22 = vcombine.low %v764_v16, %v779_v18  ;;  %v788_v23 = vcombine.high %v764_v16, %v779_v18 }
 0x42b   :  { %v795_v24 = vrot.slane %v787_v22, %v686_v61  ;;  %v803_v25 = vcombine.low %v771_v20, %v786_v21  ;;  %v804_v26 = vcombine.high %v771_v20, %v786_v21  ;;  %v802_v27 = vrot.slane %v788_v23, %v686_v61 }
 0x42d   :  { %828 = vrot.lane.b32.xlu0 %v802_v27, %s1110_s1  ;;  %v819_v28 = vcombine.high %v795_v24, %v1108_v10  ;;  %v811_v29 = vrot.slane %v803_v25, %v686_v61  ;;  %v818_v31 = vrot.slane %v804_v26, %v686_v61  ;;  %v820_v34 = vcombine.high %v802_v27, %v1108_v10 }
 0x42f   :  { %824 = vrot.lane.b32.xlu1 %v819_v28, %s1116_s27  ;;  %v821_v30 = vcombine.high %v811_v29, %v1108_v10  ;;  %v822_v32 = vcombine.high %v818_v31, %v1108_v10 }
 0x431   :  { %836 = vrot.lane.b32.xlu0 %v821_v30, %s1116_s27 }
 0x433   :  { %840 = vrot.lane.b32.xlu1 %v818_v31, %s1110_s1 }
 0x435   :  { %844 = vrot.lane.b32.xlu0 %v822_v32, %s1107_s0 }
 0x437   :  { %832 = vrot.lane.b32.xlu1 %v820_v34, %s1107_s0 }
 0x439   :  { %740 = vrot.lane.b32.xlu0 %v714_v35, %s1117_s28 }
 0x43b   :  { %736 = vrot.lane.b32.xlu1 %v710_v33, %s1118_s29 }
 0x49f   :  { %v829_v41 = vpop.permute.xlu0 %828 }
 0x4a1   :  { %v825_v42 = vpop.permute.xlu1 %824 }
 0x4a2   :  { %v847_v10 = vsel %vm53_vm0, %v795_v24, %v825_v42 }
 0x4a3   :  { %v837_v43 = vpop.permute.xlu0 %836  ;;  %v849_v51 = vsel %vm848_vm5, %v847_v10, %v829_v41 }
 0x4a4   :  { %v852_v44 = vsel %vm53_vm0, %v811_v29, %v837_v43 }
 0x4a5   :  { %v841_v46 = vpop.permute.xlu1 %840 }
 0x4a6   :  { %v853_v47 = vsel %vm848_vm5, %v852_v44, %v841_v46 }
 0x4a7   :  { %v845_v48 = vpop.permute.xlu0 %844 }
 0x4a8   :  { %v854_v54 = vsel %vm850_vm6, %v853_v47, %v845_v48 }
 0x4a9   :  { %v833_v52 = vpop.permute.xlu1 %832 }
 0x4aa   :  { %v851_v55 = vsel %vm850_vm6, %v849_v51, %v833_v52 }
 0x4ab   :  { %v857_v56 = vcombine.low %v851_v55, %v854_v54  ;;  %v741_v59 = vpop.permute.xlu0 %740 }
 0x4ad   :  { %909 = vst.sshfl [vmem:[#allocation10] sm:$0x33 pattern:$0x76325410] %v857_v56  ;;  %v737_v58 = vpop.permute.xlu1 %736 }
 0x4ae   :  { %v752_v60 = vsel %vm751_vm8, %v750_v57, %v737_v58 }
 0x4af   :  { %1066 = shalt.err (!%p1063_p0)
}
 0x4b0   :  { %876 = dma.vmem_to_hbm [thread:$0]  %s874_s4, 64, %s1221_s2, [#allocation7]   ;;  %v754_v61 = vsel %vm753_vm9, %v752_v60, %v741_v59 }
 0x4b1   :  { %756 = vst.msk [vmem:[#allocation11] sm:$0x3] %vm755_vm10, %v754_v61  ;;  %s1075_s10 = scalar_lea.vmem %s884_s6, 32  ;;  %p1080_p2 = scmp.lt.s32.totalorder %s884_s6, %s884_s6 }
 0x4b2   :  { %p1076_p1 = scmp.ne.s32.totalorder %s884_s6, %s1075_s10  ;;  %p1081_p3 = scmp.lt.s32.totalorder %s1075_s10, %s1075_s10 }
 0x4b4   :  { %p1082_p4 = por %p1081_p3, %p1080_p2 }
 0x4b6   :  { %p1083_p5 = pnand %p1082_p4, %p1076_p1 }
 0x4b8   :  { %1086 = shalt.err (!%p1083_p5)
}
 0x4b9   :  { %886 = dma.vmem_to_hbm [thread:$0]  %s884_s6, 32, %s1222_s3, [#allocation12]  }
 0x4ba   :  { %1099 = dma.done.wait [#allocation7], 64  }
 0x4bb   :  { %1100 = vsyncadd [#allocation7], 4294967232 }
 0x4bc   :  { %1101 = dma.done.wait [#allocation12], 32  }
 0x4bd   :  { %1102 = vsyncadd [#allocation12], 4294967264 }
 0x4be   :  { %893 = vsyncpa [#allocation6], 1 }
 0x4bf   :  { %894 = vsyncpa [#allocation9], 1 }
 0x4c0   :  { %895 = vsyncpa [#allocation7], 1 }
 0x4c1   :  { %896 = vsyncpa [#allocation12], 1 }

// kernel: tpu_custom_call.1
= control target key start
LH: loop header
LB: loop body
LE: loop exit
PB: predicated region body
PF: predicated region fallthrough
CT: control target
= control target key end

     0   :  { %9 = vsyncpa [#allocation6], 0  ;;  %s1219_s0 = inlined_call_operand.hbm [shape: f32[2,8,32], index: 0, kind: input, shape index: {}]   ;;  %s1220_s1 = inlined_call_operand.hbm [shape: f32[32,96], index: 1, kind: input, shape index: {}]   ;;  %s1221_s2 = inlined_call_operand.hbm [shape: f32[2,256], index: 2, kind: output, shape index: {0}]   ;;  %s1222_s3 = inlined_call_operand.hbm [shape: f32[2,64], index: 3, kind: output, shape index: {1}]  }
   0x1   :  { %10 = vsyncpa [#allocation9], 0 }
   0x2   :  { %11 = vsyncpa [#allocation7], 0 }
   0x3   :  { %12 = vsyncpa [#allocation12], 0  ;;  %s1103_s12 = smov [#allocation5]  }
   0x4   :  { %s18_s13 = sshll.u32 %s1103_s12, 4  ;;  %s19_s13 = int_to_ptr.vmem [resolvable:$true] %s18_s13 }
   0x5   :  { %s1023_s14 = scalar_lea.vmem %s19_s13, 256  ;;  %p1028_p1 = scmp.lt.s32.totalorder %s19_s13, %s19_s13 }
   0x6   :  { %p1024_p0 = scmp.ne.s32.totalorder %s19_s13, %s1023_s14  ;;  %p1029_p2 = scmp.lt.s32.totalorder %s1023_s14, %s1023_s14 }
   0x8   :  { %p1030_p3 = por %p1029_p2, %p1028_p1 }
   0xa   :  { %p1031_p4 = pnand %p1030_p3, %p1024_p0 }
   0xc   :  { %1034 = shalt.err (!%p1031_p4)
}
   0xd   :  { %s1104_s15 = smov 128   ;;  %s1105_s16 = smov 8  }
   0xe   :  { %24 = dma.hbm_to_vmem [thread:$0]  %s1219_s0, 256, %s19_s13, [#allocation6], %s1104_s15, %s1104_s15, %s1105_s16  }
   0xf   :  { %s1106_s19 = smov [#allocation8]  }
  0x10   :  { %s30_s20 = sshll.u32 %s1106_s19, 4  ;;  %s31_s20 = int_to_ptr.vmem [resolvable:$true] %s30_s20 }
  0x11   :  { %s1043_s21 = scalar_lea.vmem %s31_s20, 512  ;;  %p1048_p6 = scmp.lt.s32.totalorder %s31_s20, %s31_s20 }
  0x12   :  { %p1044_p5 = scmp.ne.s32.totalorder %s31_s20, %s1043_s21  ;;  %p1049_p7 = scmp.lt.s32.totalorder %s1043_s21, %s1043_s21 }
  0x14   :  { %p1050_p8 = por %p1049_p7, %p1048_p6 }
  0x16   :  { %p1051_p9 = pnand %p1050_p8, %p1044_p5 }
  0x18   :  { %1054 = shalt.err (!%p1051_p9)
}
  0x19   :  { %36 = dma.hbm_to_vmem [thread:$0]  %s1220_s1, 512, %s31_s20, [#allocation9], %s1104_s15, %s1104_s15, %s1105_s16  }
  0x1a   :  { %1095 = dma.done.wait [#allocation6], 256  }
  0x1b   :  { %1096 = vsyncadd [#allocation6], 4294967040 }
  0x1c   :  { %1097 = dma.done.wait [#allocation9], 512  }
  0x1d   :  { %1098 = vsyncadd [#allocation9], 4294966784  ;;  %vm53_vm0 = vcmask 261120   ;;  %v52_v0 = vld [vmem:[#allocation8 + $0x18] sm:$0xff]  ;;  %v50_v1 = vld [vmem:[#allocation8 + $0x8] sm:$0xff]  ;;  %s1107_s0 = smov 96   ;;  %v653_v47 = vlaneseq }
  0x1e   :  { %145 = vrot.lane.b32.xlu0 %v52_v0, %s1107_s0  ;;  %141 = vrot.lane.b32.xlu1 %v50_v1, %s1107_s0  ;;  %v47_v2 = vld [vmem:[#allocation5] sm:$0xff]  ;;  %v49_v4 = vld [vmem:[#allocation8] sm:$0xff]  ;;  %v48_v5 = vld [vmem:[#allocation5 + $0x8] sm:$0xff]  ;;  %v1108_v10 = vmov 0.0   ;;  %vm1109_vm1 = vmmov 0   ;;  %s1110_s1 = smov 64  }
  0x1f   :  { %v51_v3 = vld [vmem:[#allocation8 + $0x10] sm:$0xff]  ;;  %936 = vmatprep.subr.mxu0 %v52_v0  ;;  %955 = vmatprep.mubr.msk.f32.mxu1 %vm53_vm0, %v47_v2  ;;  %vm480_vm2 = vcmask 64512   ;;  %v1111_v45 = vmov 1983009808   ;;  %v654_v49 = vshrl.u32 %v653_v47, 7  ;;  %s1113_s24 = smov 16  }
  0x20   :  { %937 = vmatpush3.msra.mxu0 %v52_v0  ;;  %944 = vmatprep.mubr.msk.f32.mxu0 %vm53_vm0, %v47_v2  ;;  %v651_v46 = vunpack.c.l.s4 %v1111_v45  ;;  %v1112_v50 = vmov 1934713408   ;;  %s1114_s25 = smov 40   ;;  %s1115_s26 = smov 24   ;;  %vm744_vm3 = vcmask 130048   ;;  %vm746_vm4 = vcmask 195584  }
  0x21   :  { %938 = vmatprep.subr.mxu0 %v51_v3  ;;  %v682_v51 = vunpack.c.l.s4 %v1112_v50  ;;  %s1116_s27 = smov 32   ;;  %s1117_s28 = smov 56   ;;  %vm848_vm5 = vcmask 523264   ;;  %vm850_vm6 = vcmask 785408   ;;  %vm749_vm7 = vcmask 326656  }
  0x22   :  { %143 = vrot.lane.b32.xlu0 %v51_v3, %s1107_s0  ;;  %139 = vrot.lane.b32.xlu1 %v49_v4, %s1107_s0  ;;  %v652_v48 = vunpack.c.0.s8 %v651_v46  ;;  %s1118_s29 = smov 48   ;;  %s1119_s30 = smov [#allocation10]   ;;  %vm751_vm8 = vcmask 392192   ;;  %vm753_vm9 = vcmask 457728   ;;  %vm755_vm10 = vcmask 517120  }
  0x23   :  { %939 = vmatpush3.msra.mxu0 %v51_v3  ;;  %v683_v55 = vunpack.c.0.s8 %v682_v51  ;;  %s873_s4 = sshll.u32 %s1119_s30, 4  ;;  %s1120_s5 = smov [#allocation11]   ;;  %s874_s4 = int_to_ptr.vmem [resolvable:$true] %s873_s4 }
  0x24   :  { %940 = vmatprep.subr.mxu0 %v50_v1  ;;  %v655_v54 = vsub.s32 %v652_v48, %v654_v49  ;;  %s883_s6 = sshll.u32 %s1120_s5, 4  ;;  %s1055_s7 = scalar_lea.vmem %s874_s4, 64  ;;  %s884_s6 = int_to_ptr.vmem [resolvable:$true] %s883_s6 }
  0x25   :  { %941 = vmatpush3.msra.mxu0 %v50_v1  ;;  %v686_v61 = vsub.s32 %v683_v55, %v654_v49  ;;  %p1056_p10 = scmp.ne.s32.totalorder %s874_s4, %s1055_s7  ;;  %p1060_p11 = scmp.lt.s32.totalorder %s874_s4, %s874_s4 }
  0x26   :  { %942 = vmatprep.subr.mxu0 %v49_v4  ;;  %232 = vrot.lane.b32.xlu0 %v52_v0, %s1110_s1  ;;  %p1061_p12 = scmp.lt.s32.totalorder %s1055_s7, %s1055_s7 }
  0x27   :  { %943 = vmatpush3.msra.mxu0 %v49_v4  ;;  %230 = vrot.lane.b32.xlu1 %v51_v3, %s1110_s1 }
  0x28   :  { %945 = vmatmul.mubr.msk.f32.vlgmr.msra.gmra.mxu0 %vm53_vm0, %v48_v5  ;;  %p1062_p13 = por %p1061_p12, %p1060_p11 }
  0x29   :  { %966 = vmatprep.mubr.msk.f32.mxu0 %vm53_vm0, %v47_v2 }
  0x2a   :  { %228 = vrot.lane.b32.xlu0 %v50_v1, %s1110_s1  ;;  %p1063_p0 = pnand %p1062_p13, %p1056_p10 }
  0x2b   :  { %226 = vrot.lane.b32.xlu1 %v49_v4, %s1110_s1 }
  0x90   :  { %v146_v6 = vpop.permute.xlu0 %145  ;;  %v142_v7 = vpop.permute.xlu1 %141 }
  0x91   :  { %947 = vmatprep.subr.mxu1 %v146_v6 }
  0x92   :  { %948 = vmatpush3.msra.mxu1 %v146_v6 }
  0x94   :  { %v144_v8 = vpop.permute.xlu0 %143  ;;  %v140_v9 = vpop.permute.xlu1 %139 }
  0x95   :  { %949 = vmatprep.subr.mxu1 %v144_v8 }
  0x96   :  { %950 = vmatpush3.msra.mxu1 %v144_v8 }
  0x97   :  { %951 = vmatprep.subr.mxu1 %v142_v7 }
  0x98   :  { %952 = vmatpush3.msra.mxu1 %v142_v7  ;;  %v233_v19 = vpop.permute.xlu0 %232 }
  0x99   :  { %953 = vmatprep.subr.mxu1 %v140_v9  ;;  %v231_v20 = vpop.permute.xlu1 %230  ;;  %958 = vmatprep.subr.mxu0 %v233_v19 }
  0x9a   :  { %954 = vmatpush3.msra.mxu1 %v140_v9  ;;  %959 = vmatpush3.msra.mxu0 %v233_v19 }
  0x9b   :  { %956 = vmatmul.mubr.msk.f32.vlgmr.msra.gmra.mxu1 %vm53_vm0, %v48_v5  ;;  %969 = vmatprep.subr.mxu1 %v1108_v10 }
  0x9c   :  { %971 = vmatprep.mubr.msk.f32.mxu1 %vm1109_vm1, %v1108_v10  ;;  %960 = vmatprep.subr.mxu0 %v231_v20  ;;  %v229_v21 = vpop.permute.xlu0 %228 }
  0x9d   :  { %961 = vmatpush3.msra.mxu0 %v231_v20  ;;  %v227_v22 = vpop.permute.xlu1 %226 }
  0x9e   :  { %962 = vmatprep.subr.mxu0 %v229_v21 }
  0x9f   :  { %963 = vmatpush3.msra.mxu0 %v229_v21 }
  0xa0   :  { %964 = vmatprep.subr.mxu0 %v227_v22 }
  0xa1   :  { %965 = vmatpush3.msra.mxu0 %v227_v22 }
  0xa2   :  { %967 = vmatmul.mubr.msk.f32.vlgmr.msra.gmra.mxu0 %vm53_vm0, %v48_v5  ;;  %979 = vmatprep.subr.mxu0 %v1108_v10 }
  0xa3   :  { %981 = vmatprep.mubr.msk.f32.mxu0 %vm1109_vm1, %v1108_v10 }
  0xe8   :  { %v946_v11 = vpop.f32.mrf.mxu0 }
  0xe9   :  { %314 = vst.msk [vmem:[#allocation2 + $0x8] sm:$0xff] %vm53_vm0, %v946_v11 }
  0xea   :  { %v126_v12 = vpop.f32.mrf.mxu0 }
  0xeb   :  { %313 = vst.msk [vmem:[#allocation2] sm:$0xff] %vm53_vm0, %v126_v12 }
  0xf0   :  { %v322_v18 = vld [vmem:[#allocation2 + $0x8] sm:$0xff] }
  0xf2   :  { %v321_v16 = vld [vmem:[#allocation2] sm:$0xff] }
 0x15b   :  { %v957_v13 = vpop.f32.mrf.mxu1 }
 0x15c   :  { %316 = vst.msk [vmem:[#allocation3 + $0x8] sm:$0xff] %vm53_vm0, %v957_v13 }
 0x15d   :  { %v217_v14 = vpop.f32.mrf.mxu1 }
 0x15e   :  { %315 = vst.msk [vmem:[#allocation3] sm:$0xff] %vm53_vm0, %v217_v14 }
 0x162   :  { %v968_v39 = vpop.f32.mrf.mxu0 }
 0x163   :  { %v324_v17 = vld [vmem:[#allocation3 + $0x8] sm:$0xff]  ;;  %318 = vst.msk [vmem:[#allocation4 + $0x8] sm:$0xff] %vm53_vm0, %v968_v39 }
 0x164   :  { %v304_v40 = vpop.f32.mrf.mxu0 }
 0x165   :  { %v323_v15 = vld [vmem:[#allocation3] sm:$0xff]  ;;  %317 = vst.msk [vmem:[#allocation4] sm:$0xff] %vm53_vm0, %v304_v40 }
 0x166   :  { %970 = vmatpush3.xpose.msk.msra.mxu1 %vm53_vm0, %v323_v15 }
 0x167   :  { %974 = vmatprep.subr.mxu1 %v1108_v10 }
 0x169   :  { %972 = vmatmul.mubr.msk.f32.vlgmr.msra.gmra.mxu1 %vm53_vm0, %v321_v16 }
 0x16a   :  { %975 = vmatpush3.xpose.msk.msra.mxu1 %vm53_vm0, %v324_v17  ;;  %976 = vmatprep.mubr.msk.f32.mxu1 %vm1109_vm1, %v1108_v10  ;;  %v326_v41 = vld [vmem:[#allocation4 + $0x8] sm:$0xff] }
 0x16b   :  { %984 = vmatprep.subr.mxu1 %v1108_v10 }
 0x16c   :  { %v325_v42 = vld [vmem:[#allocation4] sm:$0xff] }
 0x16d   :  { %977 = vmatmul.mubr.msk.f32.vlgmr.msra.gmra.mxu1 %vm53_vm0, %v322_v18  ;;  %980 = vmatpush3.msra.mxu0 %v325_v42 }
 0x16e   :  { %986 = vmatprep.mubr.msk.f32.mxu1 %vm1109_vm1, %v1108_v10  ;;  %985 = vmatpush3.msra.mxu1 %v326_v41 }
 0x229   :  { %v400_v23 = vpop.f32.mrf.mxu1 }
 0x22a   :  { %v481_v24 = vsel %vm480_vm2, %v400_v23, -inf }
 0x22b   :  { %482 = vmax.xlane.f32.xlu0 %v481_v24  ;;  %v973_v25 = vpop.f32.mrf.mxu1 }
 0x22d   :  { %v476_v26 = vpop.f32.mrf.mxu1 }
 0x22e   :  { %v484_v27 = vsel %vm480_vm2, %v476_v26, -inf }
 0x22f   :  { %485 = vmax.xlane.f32.xlu1 %v484_v27  ;;  %v978_v28 = vpop.f32.mrf.mxu1 }
 0x2b4   :  { %v483_v29 = vpop.xlane.xlu0 %482 }
 0x2b5   :  { %v487_v30 = vsub.f32 %v400_v23, %v483_v29 }
 0x2b7   :  { %v489_v31 = vmul.f32 1.442695, %v487_v30 }
 0x2b8   :  { %v486_v32 = vpop.xlane.xlu1 %485 }
 0x2b9   :  { %1007 = vpow2.f32 %v489_v31  ;;  %v488_v33 = vsub.f32 %v476_v26, %v486_v32 }
 0x2bb   :  { %v491_v34 = vmul.f32 1.442695, %v488_v33 }
 0x2bd   :  { %1009 = vpow2.f32 %v491_v34 }
 0x2c6   :  { %v1008_v35 = vpop.eup %1007 }
 0x2c7   :  { %v493_v36 = vsel %vm480_vm2, %v1008_v35, 0.0 }
 0x2c8   :  { %494 = vadd.xlane.f32.xlu0 %v493_v36 }
 0x2ca   :  { %v1010_v37 = vpop.eup %1009 }
 0x2cb   :  { %v496_v38 = vsel %vm480_vm2, %v1010_v37, 0.0 }
 0x2cc   :  { %497 = vadd.xlane.f32.xlu0 %v496_v38 }
 0x351   :  { %v495_v43 = vpop.xlane.xlu0 %494 }
 0x352   :  { %1011 = vrcp.f32 %v495_v43 }
 0x355   :  { %v498_v44 = vpop.xlane.xlu0 %497 }
 0x356   :  { %1013 = vrcp.f32 %v498_v44 }
 0x35f   :  { %v1012_v52 = vpop.eup %1011 }
 0x360   :  { %v501_v53 = vmul.f32 %v1012_v52, %v1008_v35 }
 0x362   :  { %982 = vmatmul.mubr.msk.f32.vlgmr.msra.gmra.mxu0 %vm480_vm2, %v501_v53  ;;  %v649_v58 = vcombine.high %v501_v53, %v1108_v10  ;;  %v656_v59 = vrot.slane %v501_v53, %v655_v54 }
 0x363   :  { %v1014_v56 = vpop.eup %1013 }
 0x364   :  { %v502_v57 = vmul.f32 %v1014_v56, %v1010_v37  ;;  %v663_v1 = vrot.slane %v649_v58, %v655_v54 }
 0x366   :  { %987 = vmatmul.mubr.msk.f32.vlgmr.msra.gmra.mxu1 %vm480_vm2, %v502_v57  ;;  %v671_v60 = vrot.slane %v502_v57, %v655_v54  ;;  %v664_v62 = vcombine.high %v502_v57, %v1108_v10 }
 0x368   :  { %v680_v63 = vcombine.high %v656_v59, %v671_v60  ;;  %v679_v0 = vcombine.low %v656_v59, %v671_v60  ;;  %v678_v2 = vrot.slane %v664_v62, %v655_v54 }
 0x36a   :  { %v694_v3 = vrot.slane %v680_v63, %v686_v61  ;;  %v687_v4 = vrot.slane %v679_v0, %v686_v61  ;;  %v695_v5 = vcombine.low %v663_v1, %v678_v2  ;;  %v696_v6 = vcombine.high %v663_v1, %v678_v2 }
 0x36c   :  { %720 = vrot.lane.b32.xlu0 %v694_v3, %s1113_s24  ;;  %v711_v7 = vcombine.high %v687_v4, %v1108_v10  ;;  %v703_v8 = vrot.slane %v695_v5, %v686_v61  ;;  %v712_v11 = vcombine.high %v694_v3, %v1108_v10  ;;  %v710_v33 = vrot.slane %v696_v6, %v686_v61 }
 0x36e   :  { %716 = vrot.lane.b32.xlu1 %v711_v7, %s1105_s16  ;;  %v713_v9 = vcombine.high %v703_v8, %v1108_v10  ;;  %v714_v35 = vcombine.high %v710_v33, %v1108_v10 }
 0x370   :  { %732 = vrot.lane.b32.xlu0 %v713_v9, %s1114_s25 }
 0x372   :  { %724 = vrot.lane.b32.xlu1 %v712_v11, %s1115_s26 }
 0x376   :  { %728 = vrot.lane.b32.xlu1 %v703_v8, %s1116_s27 }
 0x3de   :  { %v721_v37 = vpop.permute.xlu0 %720 }
 0x3e0   :  { %v717_v36 = vpop.permute.xlu1 %716 }
 0x3e1   :  { %v743_v45 = vsel %vm480_vm2, %v687_v4, %v717_v36 }
 0x3e2   :  { %v733_v39 = vpop.permute.xlu0 %732  ;;  %v745_v49 = vsel %vm744_vm3, %v743_v45, %v721_v37 }
 0x3e4   :  { %v725_v38 = vpop.permute.xlu1 %724 }
 0x3e5   :  { %v747_v50 = vsel %vm746_vm4, %v745_v49, %v725_v38 }
 0x3e8   :  { %v729_v40 = vpop.permute.xlu1 %728 }
 0x3e9   :  { %v748_v53 = vsel %vm53_vm0, %v747_v50, %v729_v40 }
 0x3ea   :  { %v750_v57 = vsel %vm749_vm7, %v748_v53, %v733_v39 }
 0x422   :  { %v572_v12 = vpop.f32.mrf.mxu0 }
 0x423   :  { %v757_v14 = vcombine.high %v572_v12, %v1108_v10  ;;  %v764_v16 = vrot.slane %v572_v12, %v655_v54 }
 0x424   :  { %v983_v13 = vpop.f32.mrf.mxu0 }
 0x425   :  { %v771_v20 = vrot.slane %v757_v14, %v655_v54 }
 0x426   :  { %v645_v15 = vpop.f32.mrf.mxu1 }
 0x427   :  { %v772_v17 = vcombine.high %v645_v15, %v1108_v10  ;;  %v779_v18 = vrot.slane %v645_v15, %v655_v54 }
 0x428   :  { %v988_v19 = vpop.f32.mrf.mxu1 }
 0x429   :  { %v786_v21 = vrot.slane %v772_v17, %v655_v54  ;;  %v787_v22 = vcombine.low %v764_v16, %v779_v18  ;;  %v788_v23 = vcombine.high %v764_v16, %v779_v18 }
 0x42b   :  { %v795_v24 = vrot.slane %v787_v22, %v686_v61  ;;  %v803_v25 = vcombine.low %v771_v20, %v786_v21  ;;  %v804_v26 = vcombine.high %v771_v20, %v786_v21  ;;  %v802_v27 = vrot.slane %v788_v23, %v686_v61 }
 0x42d   :  { %828 = vrot.lane.b32.xlu0 %v802_v27, %s1110_s1  ;;  %v819_v28 = vcombine.high %v795_v24, %v1108_v10  ;;  %v811_v29 = vrot.slane %v803_v25, %v686_v61  ;;  %v818_v31 = vrot.slane %v804_v26, %v686_v61  ;;  %v820_v34 = vcombine.high %v802_v27, %v1108_v10 }
 0x42f   :  { %824 = vrot.lane.b32.xlu1 %v819_v28, %s1116_s27  ;;  %v821_v30 = vcombine.high %v811_v29, %v1108_v10  ;;  %v822_v32 = vcombine.high %v818_v31, %v1108_v10 }
 0x431   :  { %836 = vrot.lane.b32.xlu0 %v821_v30, %s1116_s27 }
 0x433   :  { %840 = vrot.lane.b32.xlu1 %v818_v31, %s1110_s1 }
 0x435   :  { %844 = vrot.lane.b32.xlu0 %v822_v32, %s1107_s0 }
 0x437   :  { %832 = vrot.lane.b32.xlu1 %v820_v34, %s1107_s0 }
 0x439   :  { %740 = vrot.lane.b32.xlu0 %v714_v35, %s1117_s28 }
 0x43b   :  { %736 = vrot.lane.b32.xlu1 %v710_v33, %s1118_s29 }
 0x49f   :  { %v829_v41 = vpop.permute.xlu0 %828 }
 0x4a1   :  { %v825_v42 = vpop.permute.xlu1 %824 }
 0x4a2   :  { %v847_v10 = vsel %vm53_vm0, %v795_v24, %v825_v42 }
 0x4a3   :  { %v837_v43 = vpop.permute.xlu0 %836  ;;  %v849_v51 = vsel %vm848_vm5, %v847_v10, %v829_v41 }
 0x4a4   :  { %v852_v44 = vsel %vm53_vm0, %v811_v29, %v837_v43 }
 0x4a5   :  { %v841_v46 = vpop.permute.xlu1 %840 }
 0x4a6   :  { %v853_v47 = vsel %vm848_vm5, %v852_v44, %v841_v46 }
 0x4a7   :  { %v845_v48 = vpop.permute.xlu0 %844 }
 0x4a8   :  { %v854_v54 = vsel %vm850_vm6, %v853_v47, %v845_v48 }
 0x4a9   :  { %v833_v52 = vpop.permute.xlu1 %832 }
 0x4aa   :  { %v851_v55 = vsel %vm850_vm6, %v849_v51, %v833_v52 }
 0x4ab   :  { %v857_v56 = vcombine.low %v851_v55, %v854_v54  ;;  %v741_v59 = vpop.permute.xlu0 %740 }
 0x4ad   :  { %909 = vst.sshfl [vmem:[#allocation10] sm:$0x33 pattern:$0x76325410] %v857_v56  ;;  %v737_v58 = vpop.permute.xlu1 %736 }
 0x4ae   :  { %v752_v60 = vsel %vm751_vm8, %v750_v57, %v737_v58 }
 0x4af   :  { %1066 = shalt.err (!%p1063_p0)
}
 0x4b0   :  { %876 = dma.vmem_to_hbm [thread:$0]  %s874_s4, 64, %s1221_s2, [#allocation7]   ;;  %v754_v61 = vsel %vm753_vm9, %v752_v60, %v741_v59 }
 0x4b1   :  { %756 = vst.msk [vmem:[#allocation11] sm:$0x3] %vm755_vm10, %v754_v61  ;;  %s1075_s10 = scalar_lea.vmem %s884_s6, 32  ;;  %p1080_p2 = scmp.lt.s32.totalorder %s884_s6, %s884_s6 }
 0x4b2   :  { %p1076_p1 = scmp.ne.s32.totalorder %s884_s6, %s1075_s10  ;;  %p1081_p3 = scmp.lt.s32.totalorder %s1075_s10, %s1075_s10 }
 0x4b4   :  { %p1082_p4 = por %p1081_p3, %p1080_p2 }
 0x4b6   :  { %p1083_p5 = pnand %p1082_p4, %p1076_p1 }
 0x4b8   :  { %1086 = shalt.err (!%p1083_p5)
}
 0x4b9   :  { %886 = dma.vmem_to_hbm [thread:$0]  %s884_s6, 32, %s1222_s3, [#allocation12]  }
 0x4ba   :  { %1099 = dma.done.wait [#allocation7], 64  }
 0x4bb   :  { %1100 = vsyncadd [#allocation7], 4294967232 }
 0x4bc   :  { %1101 = dma.done.wait [#allocation12], 32  }
 0x4bd   :  { %1102 = vsyncadd [#allocation12], 4294967264 }
 0x4be   :  { %893 = vsyncpa [#allocation6], 1 }
 0x4bf   :  { %894 = vsyncpa [#allocation9], 1 }
 0x4c0   :  { %895 = vsyncpa [#allocation7], 1 }
 0x4c1   :  { %896 = vsyncpa [#allocation12], 1 }

</bundles_post_ra>
